<compile_context>
chip_gen: v5e
topology: v5e:2x2
jax: 0.10.0
libtpu: 0.0.40
codegen_flags: <defaults>
</compile_context>

<pallas_src>
import functools

import jax
import jax.numpy as jnp
from jax.experimental import pallas as pl
from jax.experimental.pallas import tpu as pltpu

_VMEM_LIMIT = 32 * 1024 * 1024  # tiles here are tiny; safe on v5e/v6e/v7x


# ---------------------------------------------------------------------------
# In-kernel helpers (operate on VMEM values in (Bblk, C, H*W) layout)
# ---------------------------------------------------------------------------
def _pw_relu(x, pw_ref):
    """1x1 conv + bias + ReLU as unrolled f32 VPU multiply-adds.

    x: (Bb, Cin, HW).  pw_ref: VMEM (Cin+1, Cout, 1) with row ci = W[:, ci]
    (i.e. entry [ci, co, 0] = W_pt[co, ci]) and the last row = bias.
    """
    cin = x.shape[1]
    acc = None
    for ci in range(cin):
        # (Bb, 1, HW) * (Cout, 1)  ->  (Bb, Cout, HW)   (sublane + lane bcast)
        term = x[:, ci:ci + 1, :] * pw_ref[ci]
        acc = term if acc is None else acc + term
    return jnp.maximum(acc + pw_ref[cin], 0.0)


def _shift_flat(x, off):
    """result[..., p] = x[..., p + off], zero-filled outside [0, HW)."""
    if off == 0:
        return x
    hw = x.shape[-1]
    pad = jnp.zeros(x.shape[:-1] + (abs(off),), x.dtype)
    if off > 0:
        return jnp.concatenate([x[..., off:], pad], axis=-1)
    return jnp.concatenate([pad, x[..., :hw + off]], axis=-1)


def _dw3x3(x, dw_ref, H, W):
    """3x3 depthwise conv, stride 1, padding 1, + bias (no ReLU).

    x: (Bb, C, H*W).  dw_ref: VMEM (10, C, 1); rows 0..8 are the taps in
    kh*3+kw order, row 9 is the bias.

    Taps are flat lane shifts of the per-image H*W axis; the zero fill at the
    axis ends handles the top/bottom halo and a per-column mask handles the
    left/right halo (row wrap).
    # TODO(synk): stride=2 (spatial downsampling) is not implemented in this
    # fused Pallas path; it needs an extra lane-subsample step after the
    # stride-1 accumulation.
    """
    hw = x.shape[-1]
    col = jax.lax.broadcasted_iota(jnp.int32, (1, 1, hw), 2) % W
    left_ok = col >= 1           # neighbour column w-1 exists
    right_ok = col <= W - 2      # neighbour column w+1 exists
    acc = None
    k = 0
    for dh in (-1, 0, 1):
        for dw in (-1, 0, 1):
            tap = _shift_flat(x, dh * W + dw)
            if dw == -1:
                tap = jnp.where(left_ok, tap, 0.0)
            elif dw == 1:
                tap = jnp.where(right_ok, tap, 0.0)
            term = tap * dw_ref[k]                    # (C, 1) lane-broadcast
            acc = term if acc is None else acc + term
            k += 1
    return acc + dw_ref[9]


def _interleave_store(o_ref, left, right):
    """Write channel_shuffle(groups=2) of concat([left, right]) directly.

    shuffled channel 2*i   = left[i]
    shuffled channel 2*i+1 = right[i]
    """
    bb, cm, hw = left.shape
    y = jnp.stack([left, right], axis=2)              # (Bb, Cm, 2, HW)
    o_ref[...] = y.reshape(bb, 2 * cm, hw)


# ---------------------------------------------------------------------------
# Fused kernels (one invocation = one batch block, channels-major layout)
# ---------------------------------------------------------------------------
def _bm1_kernel(x_ref, pw1_ref, dw_ref, pw2_ref, o_ref, *, H, W, Cm):
    """benchmodel=1: out = shuffle(concat([x1, branch2(x2)]))."""
    x = x_ref[...]                                    # (Bb, 2*Cm, HW)
    x1 = x[:, :Cm, :]
    x2 = x[:, Cm:, :]
    h = _pw_relu(x2, pw1_ref)
    d = _dw3x3(h, dw_ref, H, W)
    r = _pw_relu(d, pw2_ref)
    _interleave_store(o_ref, x1, r)


def _bm2_kernel(x_ref, dw1_ref, pwb1_ref, pw1_ref, dw2_ref, pw2_ref, o_ref,
                *, H, W):
    """benchmodel=2: out = shuffle(concat([branch1(x), branch2(x)]))."""
    x = x_ref[...]                                    # (Bb, Cin, HW)
    # branch1: 3x3 dw + bias -> 1x1 + ReLU
    y1 = _pw_relu(_dw3x3(x, dw1_ref, H, W), pwb1_ref)
    # branch2: 1x1 + ReLU -> 3x3 dw + bias -> 1x1 + ReLU
    h = _pw_relu(x, pw1_ref)
    y2 = _pw_relu(_dw3x3(h, dw2_ref, H, W), pw2_ref)
    _interleave_store(o_ref, y1, y2)


# ---------------------------------------------------------------------------
# pallas_call wrappers (grid over batch blocks, weights resident)
# ---------------------------------------------------------------------------
def _pick_bblk(B):
    for cand in (8, 4, 2, 1):
        if B % cand == 0:
            return cand
    return 1


def _const_spec(shape):
    zeros = (0,) * len(shape)
    return pl.BlockSpec(shape, lambda b: zeros)


def _fused_bm1(x3, p, H, W):
    B, C, HW = x3.shape
    Cm = C // 2
    Bblk = _pick_bblk(B)
    kern = functools.partial(_bm1_kernel, H=H, W=W, Cm=Cm)
    return pl.pallas_call(
        kern,
        out_shape=jax.ShapeDtypeStruct((B, C, HW), jnp.float32),
        grid=(B // Bblk,),
        in_specs=[
            pl.BlockSpec((Bblk, C, HW), lambda b: (b, 0, 0)),
            _const_spec(p["b2_pw1"].shape),
            _const_spec(p["b2_dw"].shape),
            _const_spec(p["b2_pw2"].shape),
        ],
        out_specs=pl.BlockSpec((Bblk, C, HW), lambda b: (b, 0, 0)),
        compiler_params=pltpu.CompilerParams(
            dimension_semantics=("parallel",),
            vmem_limit_bytes=_VMEM_LIMIT),
    )(x3, p["b2_pw1"], p["b2_dw"], p["b2_pw2"])


def _fused_bm2(x3, p, H, W):
    B, Cin, HW = x3.shape
    Cm = p["b2_pw2"].shape[1]
    Bblk = _pick_bblk(B)
    kern = functools.partial(_bm2_kernel, H=H, W=W)
    return pl.pallas_call(
        kern,
        out_shape=jax.ShapeDtypeStruct((B, 2 * Cm, HW), jnp.float32),
        grid=(B // Bblk,),
        in_specs=[
            pl.BlockSpec((Bblk, Cin, HW), lambda b: (b, 0, 0)),
            _const_spec(p["b1_dw"].shape),
            _const_spec(p["b1_pw"].shape),
            _const_spec(p["b2_pw1"].shape),
            _const_spec(p["b2_dw"].shape),
            _const_spec(p["b2_pw2"].shape),
        ],
        out_specs=pl.BlockSpec((Bblk, 2 * Cm, HW), lambda b: (b, 0, 0)),
        compiler_params=pltpu.CompilerParams(
            dimension_semantics=("parallel",),
            vmem_limit_bytes=_VMEM_LIMIT),
    )(x3, p["b1_dw"], p["b1_pw"], p["b2_pw1"], p["b2_dw"], p["b2_pw2"])


# ---------------------------------------------------------------------------
# Module forward (NCHW in / NCHW out, like the PyTorch module)
# ---------------------------------------------------------------------------
def inverted_residual(x_nchw, params, stride, benchmodel):
    """Pallas implementation of InvertedResidual.forward (stride=1)."""
    if stride != 1:
        # TODO(synk): stride=2 downsampling not implemented in the fused path.
        raise NotImplementedError("only stride=1 is implemented")
    B, C, H, W = x_nchw.shape
    x3 = x_nchw.reshape(B, C, H * W)          # free reshape, stays NCHW
    if benchmodel == 1:
        out = _fused_bm1(x3, params, H, W)
    else:
        out = _fused_bm2(x3, params, H, W)
    # Kernel already wrote channel-shuffled NCHW channels; only reshape back.
    return out.reshape(B, out.shape[1], H, W)


# ---------------------------------------------------------------------------
# Parameter conversion (PyTorch layouts -> packed kernel layouts)
# ---------------------------------------------------------------------------
def convert_params(pt):
    """PyTorch-layout tensors -> packed kernel arrays.

    1x1 conv: weight (Cout, Cin, 1, 1) + bias (Cout,) -> (Cin+1, Cout, 1)
    3x3 dw:   weight (C, 1, 3, 3)      + bias (C,)    -> (10, C, 1)
    """
    def pack_pw(w, b):
        wt = jnp.transpose(w[:, :, 0, 0], (1, 0))                 # (Cin, Cout)
        return jnp.concatenate([wt, b[None, :]], axis=0)[..., None]

    def pack_dw(w, b):
        c = w.shape[0]
        taps = jnp.transpose(w[:, 0, :, :].reshape(c, 9), (1, 0))  # (9, C)
        return jnp.concatenate([taps, b[None, :]], axis=0)[..., None]

    out = {}
    if "b1_wdw" in pt:   # benchmodel = 2
        out["b1_dw"] = pack_dw(pt["b1_wdw"], pt["b1_bdw"])
        out["b1_pw"] = pack_pw(pt["b1_wpw"], pt["b1_bpw"])
    out["b2_pw1"] = pack_pw(pt["b2_w1"], pt["b2_b1"])
    out["b2_dw"] = pack_dw(pt["b2_wdw"], pt["b2_bdw"])
    out["b2_pw2"] = pack_pw(pt["b2_w2"], pt["b2_b2"])
    return out


# ---------------------------------------------------------------------------
# Pure-JAX reference (mirrors the PyTorch module exactly, NCHW/OIHW, f32)
# ---------------------------------------------------------------------------
def _channel_shuffle_nchw(x, groups):
    b, c, h, w = x.shape
    x = x.reshape(b, groups, c // groups, h, w)
    x = jnp.transpose(x, (0, 2, 1, 3, 4))
    return x.reshape(b, c, h, w)


def _conv_ref(x, w, b, stride=1, padding=0, groups=1):
    y = jax.lax.conv_general_dilated(
        x, w, (stride, stride),
        [(padding, padding), (padding, padding)],
        dimension_numbers=("NCHW", "OIHW", "NCHW"),
        feature_group_count=groups,
        precision=jax.lax.Precision.HIGHEST)
    return y + b.reshape(1, -1, 1, 1)


def inverted_residual_ref(x, pt, stride, benchmodel):
    relu = lambda v: jnp.maximum(v, 0.0)
    if benchmodel == 1:
        c = x.shape[1]
        x1, x2 = x[:, :c // 2], x[:, c // 2:]
        h = relu(_conv_ref(x2, pt["b2_w1"], pt["b2_b1"]))
        h = _conv_ref(h, pt["b2_wdw"], pt["b2_bdw"], stride=stride, padding=1,
                      groups=h.shape[1])
        h = relu(_conv_ref(h, pt["b2_w2"], pt["b2_b2"]))
        out = jnp.concatenate([x1, h], axis=1)
    else:
        g1 = _conv_ref(x, pt["b1_wdw"], pt["b1_bdw"], stride=stride, padding=1,
                       groups=x.shape[1])
        g1 = relu(_conv_ref(g1, pt["b1_wpw"], pt["b1_bpw"]))
        g2 = relu(_conv_ref(x, pt["b2_w1"], pt["b2_b1"]))
        g2 = _conv_ref(g2, pt["b2_wdw"], pt["b2_bdw"], stride=stride, padding=1,
                       groups=g2.shape[1])
        g2 = relu(_conv_ref(g2, pt["b2_w2"], pt["b2_b2"]))
        out = jnp.concatenate([g1, g2], axis=1)
    return _channel_shuffle_nchw(out, 2)


# ---------------------------------------------------------------------------
# Demo
# ---------------------------------------------------------------------------
if __name__ == "__main__":
    key = jax.random.PRNGKey(0)
    ks = jax.random.split(key, 20)

    def nrm(k, shape, scale=0.1):
        return scale * jax.random.normal(k, shape, dtype=jnp.float32)

    run = jax.jit(inverted_residual, static_argnums=(2, 3))
    # All math is exact f32 on the VPU now -> tight tolerance vs the reference.
    TOL = dict(atol=1e-4, rtol=1e-4)

    # --- benchmodel = 1, stride = 1 :  inp = oup = 8 --------------------------
    inp = oup = 8
    cm = oup // 2
    pt1 = {
        "b2_w1": nrm(ks[0], (cm, cm, 1, 1)), "b2_b1": nrm(ks[1], (cm,)),
        "b2_wdw": nrm(ks[2], (cm, 1, 3, 3)), "b2_bdw": nrm(ks[3], (cm,)),
        "b2_w2": nrm(ks[4], (cm, cm, 1, 1)), "b2_b2": nrm(ks[5], (cm,)),
    }
    params1 = convert_params(pt1)
    x_bm1 = jax.random.normal(ks[6], (2, inp, 16, 16), dtype=jnp.float32)

    y1 = jax.block_until_ready(run(x_bm1, params1, 1, 1))
    r1 = inverted_residual_ref(x_bm1, pt1, stride=1, benchmodel=1)
    assert y1.shape == r1.shape == (2, oup, 16, 16)
    assert jnp.allclose(y1, r1, **TOL), float(jnp.max(jnp.abs(y1 - r1)))

    # --- benchmodel = 2, stride = 1 :  inp = 4, oup = 8 ------------------------
    inp2, oup2 = 4, 8
    cm2 = oup2 // 2
    pt2 = {
        "b1_wdw": nrm(ks[7], (inp2, 1, 3, 3)), "b1_bdw": nrm(ks[8], (inp2,)),
        "b1_wpw": nrm(ks[9], (cm2, inp2, 1, 1)), "b1_bpw": nrm(ks[10], (cm2,)),
        "b2_w1": nrm(ks[11], (cm2, inp2, 1, 1)), "b2_b1": nrm(ks[12], (cm2,)),
        "b2_wdw": nrm(ks[13], (cm2, 1, 3, 3)), "b2_bdw": nrm(ks[14], (cm2,)),
        "b2_w2": nrm(ks[15], (cm2, cm2, 1, 1)), "b2_b2": nrm(ks[16], (cm2,)),
    }
    params2 = convert_params(pt2)
    x_bm2 = jax.random.normal(ks[17], (2, inp2, 16, 16), dtype=jnp.float32)

    y2 = jax.block_until_ready(run(x_bm2, params2, 1, 2))
    r2 = inverted_residual_ref(x_bm2, pt2, stride=1, benchmodel=2)
    assert y2.shape == r2.shape == (2, oup2, 16, 16)
    assert jnp.allclose(y2, r2, **TOL), float(jnp.max(jnp.abs(y2 - r2)))

    print("KERNEL_OK")
</pallas_src>

<mosaic_0001>
module attributes {stable_mosaic.version = 11 : i64} {
  func.func @_bm1_kernel(%arg0: i32, %arg1: memref<2x8x256xf32, #tpu.memory_space<vmem>>, %arg2: memref<5x4x1xf32, #tpu.memory_space<vmem>>, %arg3: memref<10x4x1xf32, #tpu.memory_space<vmem>>, %arg4: memref<5x4x1xf32, #tpu.memory_space<vmem>>, %arg5: memref<2x8x256xf32, #tpu.memory_space<vmem>>) attributes {dimension_semantics = [#tpu.dimension_semantics<parallel>], iteration_bounds = array<i64: 1>, scalar_prefetch = 0 : i64, scratch_operands = 0 : i64, tpu.core_type = #tpu.core_type<tc>, window_params = [{transform_indices = @transform_0, window_bounds = array<i64: 2, 8, 256>}, {pipeline_mode = #tpu.pipeline_mode<synchronous>, transform_indices = @transform_1, window_bounds = array<i64: 5, 4, 1>}, {pipeline_mode = #tpu.pipeline_mode<synchronous>, transform_indices = @transform_2, window_bounds = array<i64: 10, 4, 1>}, {pipeline_mode = #tpu.pipeline_mode<synchronous>, transform_indices = @transform_3, window_bounds = array<i64: 5, 4, 1>}, {transform_indices = @transform_4, window_bounds = array<i64: 2, 8, 256>}]} {
    %c0 = arith.constant 0 : index
    %c0_0 = arith.constant 0 : index
    %c0_1 = arith.constant 0 : index
    %0 = vector.load %arg1[%c0, %c0_0, %c0_1] : memref<2x8x256xf32, #tpu.memory_space<vmem>>, vector<2x8x256xf32>
    %1 = vector.extract_strided_slice %0 {offsets = [0, 0, 0], sizes = [2, 4, 256], strides = [1, 1, 1]} : vector<2x8x256xf32> to vector<2x4x256xf32>
    %2 = vector.extract_strided_slice %0 {offsets = [0, 4, 0], sizes = [2, 4, 256], strides = [1, 1, 1]} : vector<2x8x256xf32> to vector<2x4x256xf32>
    %3 = vector.extract_strided_slice %2 {offsets = [0, 0, 0], sizes = [2, 1, 256], strides = [1, 1, 1]} : vector<2x4x256xf32> to vector<2x1x256xf32>
    %c0_2 = arith.constant 0 : index
    %c0_3 = arith.constant 0 : index
    %c0_4 = arith.constant 0 : index
    %4 = vector.load %arg2[%c0_2, %c0_3, %c0_4] : memref<5x4x1xf32, #tpu.memory_space<vmem>>, vector<1x4x1xf32>
    %5 = vector.shape_cast %4 : vector<1x4x1xf32> to vector<4x1xf32>
    %6 = vector.shape_cast %5 : vector<4x1xf32> to vector<1x4x1xf32>
    %7 = vector.broadcast %3 : vector<2x1x256xf32> to vector<2x4x256xf32>
    %8 = vector.broadcast %6 : vector<1x4x1xf32> to vector<2x4x256xf32>
    %9 = arith.mulf %7, %8 : vector<2x4x256xf32>
    %10 = vector.extract_strided_slice %2 {offsets = [0, 1, 0], sizes = [2, 1, 256], strides = [1, 1, 1]} : vector<2x4x256xf32> to vector<2x1x256xf32>
    %c1 = arith.constant 1 : index
    %c0_5 = arith.constant 0 : index
    %c0_6 = arith.constant 0 : index
    %11 = vector.load %arg2[%c1, %c0_5, %c0_6] : memref<5x4x1xf32, #tpu.memory_space<vmem>>, vector<1x4x1xf32>
    %12 = vector.shape_cast %11 : vector<1x4x1xf32> to vector<4x1xf32>
    %13 = vector.shape_cast %12 : vector<4x1xf32> to vector<1x4x1xf32>
    %14 = vector.broadcast %10 : vector<2x1x256xf32> to vector<2x4x256xf32>
    %15 = vector.broadcast %13 : vector<1x4x1xf32> to vector<2x4x256xf32>
    %16 = arith.mulf %14, %15 : vector<2x4x256xf32>
    %17 = arith.addf %9, %16 : vector<2x4x256xf32>
    %18 = vector.extract_strided_slice %2 {offsets = [0, 2, 0], sizes = [2, 1, 256], strides = [1, 1, 1]} : vector<2x4x256xf32> to vector<2x1x256xf32>
    %c2 = arith.constant 2 : index
    %c0_7 = arith.constant 0 : index
    %c0_8 = arith.constant 0 : index
    %19 = vector.load %arg2[%c2, %c0_7, %c0_8] : memref<5x4x1xf32, #tpu.memory_space<vmem>>, vector<1x4x1xf32>
    %20 = vector.shape_cast %19 : vector<1x4x1xf32> to vector<4x1xf32>
    %21 = vector.shape_cast %20 : vector<4x1xf32> to vector<1x4x1xf32>
    %22 = vector.broadcast %18 : vector<2x1x256xf32> to vector<2x4x256xf32>
    %23 = vector.broadcast %21 : vector<1x4x1xf32> to vector<2x4x256xf32>
    %24 = arith.mulf %22, %23 : vector<2x4x256xf32>
    %25 = arith.addf %17, %24 : vector<2x4x256xf32>
    %26 = vector.extract_strided_slice %2 {offsets = [0, 3, 0], sizes = [2, 1, 256], strides = [1, 1, 1]} : vector<2x4x256xf32> to vector<2x1x256xf32>
    %c3 = arith.constant 3 : index
    %c0_9 = arith.constant 0 : index
    %c0_10 = arith.constant 0 : index
    %27 = vector.load %arg2[%c3, %c0_9, %c0_10] : memref<5x4x1xf32, #tpu.memory_space<vmem>>, vector<1x4x1xf32>
    %28 = vector.shape_cast %27 : vector<1x4x1xf32> to vector<4x1xf32>
    %29 = vector.shape_cast %28 : vector<4x1xf32> to vector<1x4x1xf32>
    %30 = vector.broadcast %26 : vector<2x1x256xf32> to vector<2x4x256xf32>
    %31 = vector.broadcast %29 : vector<1x4x1xf32> to vector<2x4x256xf32>
    %32 = arith.mulf %30, %31 : vector<2x4x256xf32>
    %33 = arith.addf %25, %32 : vector<2x4x256xf32>
    %c4 = arith.constant 4 : index
    %c0_11 = arith.constant 0 : index
    %c0_12 = arith.constant 0 : index
    %34 = vector.load %arg2[%c4, %c0_11, %c0_12] : memref<5x4x1xf32, #tpu.memory_space<vmem>>, vector<1x4x1xf32>
    %35 = vector.shape_cast %34 : vector<1x4x1xf32> to vector<4x1xf32>
    %36 = vector.shape_cast %35 : vector<4x1xf32> to vector<1x4x1xf32>
    %37 = vector.broadcast %36 : vector<1x4x1xf32> to vector<2x4x256xf32>
    %38 = arith.addf %33, %37 : vector<2x4x256xf32>
    %cst = arith.constant 0.000000e+00 : f32
    %39 = vector.broadcast %cst : f32 to vector<2x4x256xf32>
    %40 = arith.maximumf %38, %39 : vector<2x4x256xf32>
    %41 = tpu.iota {dimensions = array<i32: 2>} : vector<1x1x256xi32>
    %c16_i32 = arith.constant 16 : i32
    %c0_i32 = arith.constant 0 : i32
    %42 = arith.cmpi eq, %c16_i32, %c0_i32 : i32
    %c1_i32 = arith.constant 1 : i32
    %43 = arith.select %42, %c1_i32, %c16_i32 : i32
    %44 = vector.broadcast %43 : i32 to vector<1x1x256xi32>
    %45 = arith.remsi %41, %44 : vector<1x1x256xi32>
    %c0_i32_13 = arith.constant 0 : i32
    %46 = vector.broadcast %c0_i32_13 : i32 to vector<1x1x256xi32>
    %47 = arith.cmpi ne, %45, %46 : vector<1x1x256xi32>
    %c0_i32_14 = arith.constant 0 : i32
    %48 = vector.broadcast %c0_i32_14 : i32 to vector<1x1x256xi32>
    %49 = arith.cmpi slt, %45, %48 : vector<1x1x256xi32>
    %c0_i32_15 = arith.constant 0 : i32
    %50 = arith.cmpi slt, %43, %c0_i32_15 : i32
    %51 = vector.broadcast %50 : i1 to vector<1x1x256xi1>
    %52 = vector.broadcast %51 : vector<1x1x256xi1> to vector<1x1x256xi1>
    %53 = arith.xori %49, %52 : vector<1x1x256xi1>
    %54 = arith.andi %53, %47 : vector<1x1x256xi1>
    %55 = vector.broadcast %43 : i32 to vector<1x1x256xi32>
    %56 = arith.addi %45, %55 : vector<1x1x256xi32>
    %57 = arith.select %54, %56, %45 : vector<1x1x256xi1>, vector<1x1x256xi32>
    %c1_i32_16 = arith.constant 1 : i32
    %58 = vector.broadcast %c1_i32_16 : i32 to vector<1x1x256xi32>
    %59 = arith.cmpi sge, %57, %58 : vector<1x1x256xi32>
    %c14_i32 = arith.constant 14 : i32
    %60 = vector.broadcast %c14_i32 : i32 to vector<1x1x256xi32>
    %61 = arith.cmpi sle, %57, %60 : vector<1x1x256xi32>
    %cst_17 = arith.constant 0.000000e+00 : f32
    %62 = vector.broadcast %cst_17 : f32 to vector<2x4x17xf32>
    %63 = vector.extract_strided_slice %40 {offsets = [0, 0, 0], sizes = [2, 4, 239], strides = [1, 1, 1]} : vector<2x4x256xf32> to vector<2x4x239xf32>
    %64 = tpu.concatenate %62, %63 in 2 : vector<2x4x17xf32>, vector<2x4x239xf32> -> vector<2x4x256xf32>
    %cst_18 = arith.constant 0.000000e+00 : f32
    %65 = vector.shape_cast %59 : vector<1x1x256xi1> to vector<1x1x256xi1>
    %66 = vector.broadcast %65 : vector<1x1x256xi1> to vector<2x4x256xi1>
    %67 = vector.broadcast %cst_18 : f32 to vector<2x4x256xf32>
    %68 = arith.select %66, %64, %67 : vector<2x4x256xi1>, vector<2x4x256xf32>
    %c0_19 = arith.constant 0 : index
    %c0_20 = arith.constant 0 : index
    %c0_21 = arith.constant 0 : index
    %69 = vector.load %arg3[%c0_19, %c0_20, %c0_21] : memref<10x4x1xf32, #tpu.memory_space<vmem>>, vector<1x4x1xf32>
    %70 = vector.shape_cast %69 : vector<1x4x1xf32> to vector<4x1xf32>
    %71 = vector.shape_cast %70 : vector<4x1xf32> to vector<1x4x1xf32>
    %72 = vector.broadcast %71 : vector<1x4x1xf32> to vector<2x4x256xf32>
    %73 = arith.mulf %68, %72 : vector<2x4x256xf32>
    %cst_22 = arith.constant 0.000000e+00 : f32
    %74 = vector.broadcast %cst_22 : f32 to vector<2x4x16xf32>
    %75 = vector.extract_strided_slice %40 {offsets = [0, 0, 0], sizes = [2, 4, 240], strides = [1, 1, 1]} : vector<2x4x256xf32> to vector<2x4x240xf32>
    %76 = tpu.concatenate %74, %75 in 2 : vector<2x4x16xf32>, vector<2x4x240xf32> -> vector<2x4x256xf32>
    %c1_23 = arith.constant 1 : index
    %c0_24 = arith.constant 0 : index
    %c0_25 = arith.constant 0 : index
    %77 = vector.load %arg3[%c1_23, %c0_24, %c0_25] : memref<10x4x1xf32, #tpu.memory_space<vmem>>, vector<1x4x1xf32>
    %78 = vector.shape_cast %77 : vector<1x4x1xf32> to vector<4x1xf32>
    %79 = vector.shape_cast %78 : vector<4x1xf32> to vector<1x4x1xf32>
    %80 = vector.broadcast %79 : vector<1x4x1xf32> to vector<2x4x256xf32>
    %81 = arith.mulf %76, %80 : vector<2x4x256xf32>
    %82 = arith.addf %73, %81 : vector<2x4x256xf32>
    %cst_26 = arith.constant 0.000000e+00 : f32
    %83 = vector.broadcast %cst_26 : f32 to vector<2x4x15xf32>
    %84 = vector.extract_strided_slice %40 {offsets = [0, 0, 0], sizes = [2, 4, 241], strides = [1, 1, 1]} : vector<2x4x256xf32> to vector<2x4x241xf32>
    %85 = tpu.concatenate %83, %84 in 2 : vector<2x4x15xf32>, vector<2x4x241xf32> -> vector<2x4x256xf32>
    %cst_27 = arith.constant 0.000000e+00 : f32
    %86 = vector.shape_cast %61 : vector<1x1x256xi1> to vector<1x1x256xi1>
    %87 = vector.broadcast %86 : vector<1x1x256xi1> to vector<2x4x256xi1>
    %88 = vector.broadcast %cst_27 : f32 to vector<2x4x256xf32>
    %89 = arith.select %87, %85, %88 : vector<2x4x256xi1>, vector<2x4x256xf32>
    %c2_28 = arith.constant 2 : index
    %c0_29 = arith.constant 0 : index
    %c0_30 = arith.constant 0 : index
    %90 = vector.load %arg3[%c2_28, %c0_29, %c0_30] : memref<10x4x1xf32, #tpu.memory_space<vmem>>, vector<1x4x1xf32>
    %91 = vector.shape_cast %90 : vector<1x4x1xf32> to vector<4x1xf32>
    %92 = vector.shape_cast %91 : vector<4x1xf32> to vector<1x4x1xf32>
    %93 = vector.broadcast %92 : vector<1x4x1xf32> to vector<2x4x256xf32>
    %94 = arith.mulf %89, %93 : vector<2x4x256xf32>
    %95 = arith.addf %82, %94 : vector<2x4x256xf32>
    %cst_31 = arith.constant 0.000000e+00 : f32
    %96 = vector.broadcast %cst_31 : f32 to vector<2x4x1xf32>
    %97 = vector.extract_strided_slice %40 {offsets = [0, 0, 0], sizes = [2, 4, 255], strides = [1, 1, 1]} : vector<2x4x256xf32> to vector<2x4x255xf32>
    %98 = tpu.concatenate %96, %97 in 2 : vector<2x4x1xf32>, vector<2x4x255xf32> -> vector<2x4x256xf32>
    %cst_32 = arith.constant 0.000000e+00 : f32
    %99 = vector.shape_cast %59 : vector<1x1x256xi1> to vector<1x1x256xi1>
    %100 = vector.broadcast %99 : vector<1x1x256xi1> to vector<2x4x256xi1>
    %101 = vector.broadcast %cst_32 : f32 to vector<2x4x256xf32>
    %102 = arith.select %100, %98, %101 : vector<2x4x256xi1>, vector<2x4x256xf32>
    %c3_33 = arith.constant 3 : index
    %c0_34 = arith.constant 0 : index
    %c0_35 = arith.constant 0 : index
    %103 = vector.load %arg3[%c3_33, %c0_34, %c0_35] : memref<10x4x1xf32, #tpu.memory_space<vmem>>, vector<1x4x1xf32>
    %104 = vector.shape_cast %103 : vector<1x4x1xf32> to vector<4x1xf32>
    %105 = vector.shape_cast %104 : vector<4x1xf32> to vector<1x4x1xf32>
    %106 = vector.broadcast %105 : vector<1x4x1xf32> to vector<2x4x256xf32>
    %107 = arith.mulf %102, %106 : vector<2x4x256xf32>
    %108 = arith.addf %95, %107 : vector<2x4x256xf32>
    %c4_36 = arith.constant 4 : index
    %c0_37 = arith.constant 0 : index
    %c0_38 = arith.constant 0 : index
    %109 = vector.load %arg3[%c4_36, %c0_37, %c0_38] : memref<10x4x1xf32, #tpu.memory_space<vmem>>, vector<1x4x1xf32>
    %110 = vector.shape_cast %109 : vector<1x4x1xf32> to vector<4x1xf32>
    %111 = vector.shape_cast %110 : vector<4x1xf32> to vector<1x4x1xf32>
    %112 = vector.broadcast %111 : vector<1x4x1xf32> to vector<2x4x256xf32>
    %113 = arith.mulf %40, %112 : vector<2x4x256xf32>
    %114 = arith.addf %108, %113 : vector<2x4x256xf32>
    %cst_39 = arith.constant 0.000000e+00 : f32
    %115 = vector.broadcast %cst_39 : f32 to vector<2x4x1xf32>
    %116 = vector.extract_strided_slice %40 {offsets = [0, 0, 1], sizes = [2, 4, 255], strides = [1, 1, 1]} : vector<2x4x256xf32> to vector<2x4x255xf32>
    %117 = tpu.concatenate %116, %115 in 2 : vector<2x4x255xf32>, vector<2x4x1xf32> -> vector<2x4x256xf32>
    %cst_40 = arith.constant 0.000000e+00 : f32
    %118 = vector.shape_cast %61 : vector<1x1x256xi1> to vector<1x1x256xi1>
    %119 = vector.broadcast %118 : vector<1x1x256xi1> to vector<2x4x256xi1>
    %120 = vector.broadcast %cst_40 : f32 to vector<2x4x256xf32>
    %121 = arith.select %119, %117, %120 : vector<2x4x256xi1>, vector<2x4x256xf32>
    %c5 = arith.constant 5 : index
    %c0_41 = arith.constant 0 : index
    %c0_42 = arith.constant 0 : index
    %122 = vector.load %arg3[%c5, %c0_41, %c0_42] : memref<10x4x1xf32, #tpu.memory_space<vmem>>, vector<1x4x1xf32>
    %123 = vector.shape_cast %122 : vector<1x4x1xf32> to vector<4x1xf32>
    %124 = vector.shape_cast %123 : vector<4x1xf32> to vector<1x4x1xf32>
    %125 = vector.broadcast %124 : vector<1x4x1xf32> to vector<2x4x256xf32>
    %126 = arith.mulf %121, %125 : vector<2x4x256xf32>
    %127 = arith.addf %114, %126 : vector<2x4x256xf32>
    %cst_43 = arith.constant 0.000000e+00 : f32
    %128 = vector.broadcast %cst_43 : f32 to vector<2x4x15xf32>
    %129 = vector.extract_strided_slice %40 {offsets = [0, 0, 15], sizes = [2, 4, 241], strides = [1, 1, 1]} : vector<2x4x256xf32> to vector<2x4x241xf32>
    %130 = tpu.concatenate %129, %128 in 2 : vector<2x4x241xf32>, vector<2x4x15xf32> -> vector<2x4x256xf32>
    %cst_44 = arith.constant 0.000000e+00 : f32
    %131 = vector.shape_cast %59 : vector<1x1x256xi1> to vector<1x1x256xi1>
    %132 = vector.broadcast %131 : vector<1x1x256xi1> to vector<2x4x256xi1>
    %133 = vector.broadcast %cst_44 : f32 to vector<2x4x256xf32>
    %134 = arith.select %132, %130, %133 : vector<2x4x256xi1>, vector<2x4x256xf32>
    %c6 = arith.constant 6 : index
    %c0_45 = arith.constant 0 : index
    %c0_46 = arith.constant 0 : index
    %135 = vector.load %arg3[%c6, %c0_45, %c0_46] : memref<10x4x1xf32, #tpu.memory_space<vmem>>, vector<1x4x1xf32>
    %136 = vector.shape_cast %135 : vector<1x4x1xf32> to vector<4x1xf32>
    %137 = vector.shape_cast %136 : vector<4x1xf32> to vector<1x4x1xf32>
    %138 = vector.broadcast %137 : vector<1x4x1xf32> to vector<2x4x256xf32>
    %139 = arith.mulf %134, %138 : vector<2x4x256xf32>
    %140 = arith.addf %127, %139 : vector<2x4x256xf32>
    %cst_47 = arith.constant 0.000000e+00 : f32
    %141 = vector.broadcast %cst_47 : f32 to vector<2x4x16xf32>
    %142 = vector.extract_strided_slice %40 {offsets = [0, 0, 16], sizes = [2, 4, 240], strides = [1, 1, 1]} : vector<2x4x256xf32> to vector<2x4x240xf32>
    %143 = tpu.concatenate %142, %141 in 2 : vector<2x4x240xf32>, vector<2x4x16xf32> -> vector<2x4x256xf32>
    %c7 = arith.constant 7 : index
    %c0_48 = arith.constant 0 : index
    %c0_49 = arith.constant 0 : index
    %144 = vector.load %arg3[%c7, %c0_48, %c0_49] : memref<10x4x1xf32, #tpu.memory_space<vmem>>, vector<1x4x1xf32>
    %145 = vector.shape_cast %144 : vector<1x4x1xf32> to vector<4x1xf32>
    %146 = vector.shape_cast %145 : vector<4x1xf32> to vector<1x4x1xf32>
    %147 = vector.broadcast %146 : vector<1x4x1xf32> to vector<2x4x256xf32>
    %148 = arith.mulf %143, %147 : vector<2x4x256xf32>
    %149 = arith.addf %140, %148 : vector<2x4x256xf32>
    %cst_50 = arith.constant 0.000000e+00 : f32
    %150 = vector.broadcast %cst_50 : f32 to vector<2x4x17xf32>
    %151 = vector.extract_strided_slice %40 {offsets = [0, 0, 17], sizes = [2, 4, 239], strides = [1, 1, 1]} : vector<2x4x256xf32> to vector<2x4x239xf32>
    %152 = tpu.concatenate %151, %150 in 2 : vector<2x4x239xf32>, vector<2x4x17xf32> -> vector<2x4x256xf32>
    %cst_51 = arith.constant 0.000000e+00 : f32
    %153 = vector.shape_cast %61 : vector<1x1x256xi1> to vector<1x1x256xi1>
    %154 = vector.broadcast %153 : vector<1x1x256xi1> to vector<2x4x256xi1>
    %155 = vector.broadcast %cst_51 : f32 to vector<2x4x256xf32>
    %156 = arith.select %154, %152, %155 : vector<2x4x256xi1>, vector<2x4x256xf32>
    %c8 = arith.constant 8 : index
    %c0_52 = arith.constant 0 : index
    %c0_53 = arith.constant 0 : index
    %157 = vector.load %arg3[%c8, %c0_52, %c0_53] : memref<10x4x1xf32, #tpu.memory_space<vmem>>, vector<1x4x1xf32>
    %158 = vector.shape_cast %157 : vector<1x4x1xf32> to vector<4x1xf32>
    %159 = vector.shape_cast %158 : vector<4x1xf32> to vector<1x4x1xf32>
    %160 = vector.broadcast %159 : vector<1x4x1xf32> to vector<2x4x256xf32>
    %161 = arith.mulf %156, %160 : vector<2x4x256xf32>
    %162 = arith.addf %149, %161 : vector<2x4x256xf32>
    %c9 = arith.constant 9 : index
    %c0_54 = arith.constant 0 : index
    %c0_55 = arith.constant 0 : index
    %163 = vector.load %arg3[%c9, %c0_54, %c0_55] : memref<10x4x1xf32, #tpu.memory_space<vmem>>, vector<1x4x1xf32>
    %164 = vector.shape_cast %163 : vector<1x4x1xf32> to vector<4x1xf32>
    %165 = vector.shape_cast %164 : vector<4x1xf32> to vector<1x4x1xf32>
    %166 = vector.broadcast %165 : vector<1x4x1xf32> to vector<2x4x256xf32>
    %167 = arith.addf %162, %166 : vector<2x4x256xf32>
    %168 = vector.extract_strided_slice %167 {offsets = [0, 0, 0], sizes = [2, 1, 256], strides = [1, 1, 1]} : vector<2x4x256xf32> to vector<2x1x256xf32>
    %c0_56 = arith.constant 0 : index
    %c0_57 = arith.constant 0 : index
    %c0_58 = arith.constant 0 : index
    %169 = vector.load %arg4[%c0_56, %c0_57, %c0_58] : memref<5x4x1xf32, #tpu.memory_space<vmem>>, vector<1x4x1xf32>
    %170 = vector.shape_cast %169 : vector<1x4x1xf32> to vector<4x1xf32>
    %171 = vector.shape_cast %170 : vector<4x1xf32> to vector<1x4x1xf32>
    %172 = vector.broadcast %168 : vector<2x1x256xf32> to vector<2x4x256xf32>
    %173 = vector.broadcast %171 : vector<1x4x1xf32> to vector<2x4x256xf32>
    %174 = arith.mulf %172, %173 : vector<2x4x256xf32>
    %175 = vector.extract_strided_slice %167 {offsets = [0, 1, 0], sizes = [2, 1, 256], strides = [1, 1, 1]} : vector<2x4x256xf32> to vector<2x1x256xf32>
    %c1_59 = arith.constant 1 : index
    %c0_60 = arith.constant 0 : index
    %c0_61 = arith.constant 0 : index
    %176 = vector.load %arg4[%c1_59, %c0_60, %c0_61] : memref<5x4x1xf32, #tpu.memory_space<vmem>>, vector<1x4x1xf32>
    %177 = vector.shape_cast %176 : vector<1x4x1xf32> to vector<4x1xf32>
    %178 = vector.shape_cast %177 : vector<4x1xf32> to vector<1x4x1xf32>
    %179 = vector.broadcast %175 : vector<2x1x256xf32> to vector<2x4x256xf32>
    %180 = vector.broadcast %178 : vector<1x4x1xf32> to vector<2x4x256xf32>
    %181 = arith.mulf %179, %180 : vector<2x4x256xf32>
    %182 = arith.addf %174, %181 : vector<2x4x256xf32>
    %183 = vector.extract_strided_slice %167 {offsets = [0, 2, 0], sizes = [2, 1, 256], strides = [1, 1, 1]} : vector<2x4x256xf32> to vector<2x1x256xf32>
    %c2_62 = arith.constant 2 : index
    %c0_63 = arith.constant 0 : index
    %c0_64 = arith.constant 0 : index
    %184 = vector.load %arg4[%c2_62, %c0_63, %c0_64] : memref<5x4x1xf32, #tpu.memory_space<vmem>>, vector<1x4x1xf32>
    %185 = vector.shape_cast %184 : vector<1x4x1xf32> to vector<4x1xf32>
    %186 = vector.shape_cast %185 : vector<4x1xf32> to vector<1x4x1xf32>
    %187 = vector.broadcast %183 : vector<2x1x256xf32> to vector<2x4x256xf32>
    %188 = vector.broadcast %186 : vector<1x4x1xf32> to vector<2x4x256xf32>
    %189 = arith.mulf %187, %188 : vector<2x4x256xf32>
    %190 = arith.addf %182, %189 : vector<2x4x256xf32>
    %191 = vector.extract_strided_slice %167 {offsets = [0, 3, 0], sizes = [2, 1, 256], strides = [1, 1, 1]} : vector<2x4x256xf32> to vector<2x1x256xf32>
    %c3_65 = arith.constant 3 : index
    %c0_66 = arith.constant 0 : index
    %c0_67 = arith.constant 0 : index
    %192 = vector.load %arg4[%c3_65, %c0_66, %c0_67] : memref<5x4x1xf32, #tpu.memory_space<vmem>>, vector<1x4x1xf32>
    %193 = vector.shape_cast %192 : vector<1x4x1xf32> to vector<4x1xf32>
    %194 = vector.shape_cast %193 : vector<4x1xf32> to vector<1x4x1xf32>
    %195 = vector.broadcast %191 : vector<2x1x256xf32> to vector<2x4x256xf32>
    %196 = vector.broadcast %194 : vector<1x4x1xf32> to vector<2x4x256xf32>
    %197 = arith.mulf %195, %196 : vector<2x4x256xf32>
    %198 = arith.addf %190, %197 : vector<2x4x256xf32>
    %c4_68 = arith.constant 4 : index
    %c0_69 = arith.constant 0 : index
    %c0_70 = arith.constant 0 : index
    %199 = vector.load %arg4[%c4_68, %c0_69, %c0_70] : memref<5x4x1xf32, #tpu.memory_space<vmem>>, vector<1x4x1xf32>
    %200 = vector.shape_cast %199 : vector<1x4x1xf32> to vector<4x1xf32>
    %201 = vector.shape_cast %200 : vector<4x1xf32> to vector<1x4x1xf32>
    %202 = vector.broadcast %201 : vector<1x4x1xf32> to vector<2x4x256xf32>
    %203 = arith.addf %198, %202 : vector<2x4x256xf32>
    %cst_71 = arith.constant 0.000000e+00 : f32
    %204 = vector.broadcast %cst_71 : f32 to vector<2x4x256xf32>
    %205 = arith.maximumf %203, %204 : vector<2x4x256xf32>
    %206 = vector.shape_cast %1 : vector<2x4x256xf32> to vector<2x4x1x256xf32>
    %207 = vector.shape_cast %205 : vector<2x4x256xf32> to vector<2x4x1x256xf32>
    %208 = tpu.concatenate %206, %207 in 2 : vector<2x4x1x256xf32>, vector<2x4x1x256xf32> -> vector<2x4x2x256xf32>
    %209 = vector.shape_cast %208 : vector<2x4x2x256xf32> to vector<2x8x256xf32>
    %c0_72 = arith.constant 0 : index
    %c0_73 = arith.constant 0 : index
    %c0_74 = arith.constant 0 : index
    %210 = vector.load %arg5[%c0_72, %c0_73, %c0_74] : memref<2x8x256xf32, #tpu.memory_space<vmem>>, vector<2x8x256xf32>
    tpu.vector_store %arg5[%c0_72, %c0_73, %c0_74], %209 {strides = array<i32>} : memref<2x8x256xf32, #tpu.memory_space<vmem>>, vector<2x8x256xf32>,
    return
  }
  func.func @transform_0(%arg0: i32) -> (i32, i32, i32) {
    %c0_i32 = arith.constant 0 : i32
    %c0_i32_0 = arith.constant 0 : i32
    %c0_i32_1 = arith.constant 0 : i32
    return %arg0, %c0_i32, %c0_i32_0 : i32, i32, i32
  }
  func.func @transform_1(%arg0: i32) -> (i32, i32, i32) {
    %c0_i32 = arith.constant 0 : i32
    %c0_i32_0 = arith.constant 0 : i32
    %c0_i32_1 = arith.constant 0 : i32
    %c0_i32_2 = arith.constant 0 : i32
    return %c0_i32, %c0_i32_0, %c0_i32_1 : i32, i32, i32
  }
  func.func @transform_2(%arg0: i32) -> (i32, i32, i32) {
    %c0_i32 = arith.constant 0 : i32
    %c0_i32_0 = arith.constant 0 : i32
    %c0_i32_1 = arith.constant 0 : i32
    %c0_i32_2 = arith.constant 0 : i32
    return %c0_i32, %c0_i32_0, %c0_i32_1 : i32, i32, i32
  }
  func.func @transform_3(%arg0: i32) -> (i32, i32, i32) {
    %c0_i32 = arith.constant 0 : i32
    %c0_i32_0 = arith.constant 0 : i32
    %c0_i32_1 = arith.constant 0 : i32
    %c0_i32_2 = arith.constant 0 : i32
    return %c0_i32, %c0_i32_0, %c0_i32_1 : i32, i32, i32
  }
  func.func @transform_4(%arg0: i32) -> (i32, i32, i32) {
    %c0_i32 = arith.constant 0 : i32
    %c0_i32_0 = arith.constant 0 : i32
    %c0_i32_1 = arith.constant 0 : i32
    return %arg0, %c0_i32, %c0_i32_0 : i32, i32, i32
  }
}

</mosaic_0001>

<bundles_post_ra>
// kernel: inverted_residual.1
= control target key start
LH: loop header
LB: loop body
LE: loop exit
PB: predicated region body
PF: predicated region fallthrough
CT: control target
= control target key end

     0   :  { %v754_v0 = vmov 0   ;;  %s756_s22 = smov 16   ;;  %s757_s23 = smov 15   ;;  %vm150_vm0 = vcmask 138240   ;;  %vm185_vm2 = vcmask 130048   ;;  %vm217_vm3 = vcmask 121856   ;;  %s1164_s1 = inlined_call_operand.vmem [shape: f32[5,4,1], index: 1, kind: input, shape index: {}]   ;;  %s1165_s2 = inlined_call_operand.vmem [shape: f32[10,4,1], index: 2, kind: input, shape index: {}]   ;;  %s1166_s0 = inlined_call_operand.vmem [shape: f32[2,8,256], index: 0, kind: input, shape index: {}]   ;;  %s1167_s3 = inlined_call_operand.vmem [shape: f32[5,4,1], index: 3, kind: input, shape index: {}]   ;;  %s1168_s4 = inlined_call_operand.vmem [shape: f32[2,8,256], index: 4, kind: output, shape index: {}]  }
   0x1   :  { %752 = vset.pattern.permute.xlu1 %v754_v0  ;;  %751 = vset.pattern.permute.xlu0 %v754_v0  ;;  %v726_v1 = vld [vmem:[%s1164_s1 + $0x8] sm:$0xf]  ;;  %v21_v2 = vld [vmem:[%s1164_s1] sm:$0xf]  ;;  %v728_v3 = vld [vmem:[%s1164_s1 + $0x10] sm:$0xf] }
   0x2   :  { %62 = vperm.xlu1 %752, %v726_v1   ;;  %28 = vperm.xlu0 %751, %v21_v2   ;;  %v727_v4 = vld [vmem:[%s1164_s1 + $0xc] sm:$0xf]  ;;  %v725_v5 = vld [vmem:[%s1164_s1 + $0x4] sm:$0xf]  ;;  %v730_v7 = vld [vmem:[%s1165_s2 + $0x8] sm:$0xf] }
   0x3   :  { %753 = vset.pattern.permute.xlu2 %v754_v0  ;;  %v729_v6 = vld [vmem:[%s1165_s2 + $0x4] sm:$0xf]  ;;  %v167_v8 = vld [vmem:[%s1165_s2] sm:$0xf]  ;;  %v734_v9 = vld [vmem:[%s1165_s2 + $0x18] sm:$0xf] }
   0x4   :  { %96 = vperm.xlu2 %753, %v728_v3   ;;  %v732_v10 = vld [vmem:[%s1165_s2 + $0x10] sm:$0xf]  ;;  %v731_v11 = vld [vmem:[%s1165_s2 + $0xc] sm:$0xf]  ;;  %v735_v12 = vld [vmem:[%s1165_s2 + $0x1c] sm:$0xf] }
   0x5   :  { %v733_v13 = vld [vmem:[%s1165_s2 + $0x14] sm:$0xf]  ;;  %v830_v16 = vld [vmem:[%s1166_s0] sm:$0xff]  ;;  %v835_v17 = vld [vmem:[%s1166_s0 + $0x8] sm:$0xff]  ;;  %s758_s24 = smov 1   ;;  %s759_s25 = smov 127  }
   0x6   :  { %v840_v18 = vld [vmem:[%s1166_s0 + $0x10] sm:$0xff]  ;;  %v845_v19 = vld [vmem:[%s1166_s0 + $0x18] sm:$0xff]  ;;  %v22_v20 = vperm.slane %v830_v16, 4  ;;  %v23_v21 = vperm.slane %v835_v17, 4  ;;  %v37_v23 = vperm.slane %v830_v16, 5  ;;  %v38_v24 = vperm.slane %v835_v17, 5 }
   0x7   :  { %v24_v22 = vperm.slane %v840_v18, 4  ;;  %v39_v25 = vperm.slane %v840_v18, 5  ;;  %v40_v26 = vperm.slane %v845_v19, 5  ;;  %v56_v27 = vperm.slane %v830_v16, 6  ;;  %s755_s0 = smov 17   ;;  %s760_s26 = smov 113  }
   0x8   :  { %v57_v28 = vperm.slane %v835_v17, 6  ;;  %v25_v29 = vperm.slane %v845_v19, 4  ;;  %v58_v30 = vperm.slane %v840_v18, 6  ;;  %v75_v31 = vperm.slane %v830_v16, 7  ;;  %s761_s27 = smov 112   ;;  %s762_s28 = smov 111  }
   0x9   :  { %v76_v32 = vperm.slane %v835_v17, 7  ;;  %v77_v37 = vperm.slane %v840_v18, 7  ;;  %v59_v43 = vperm.slane %v845_v19, 6  ;;  %v78_v59 = vperm.slane %v845_v19, 7 }
   0xa   :  { %81 = vperm.xlu1 %752, %v727_v4   ;;  %43 = vperm.xlu0 %751, %v725_v5   ;;  %vm257_vm4 = vcmask 7168   ;;  %vm308_vm8 = vcmask 1039360   ;;  %vm344_vm9 = vcmask 924672   ;;  %vm380_vm10 = vcmask 916480  }
   0xb   :  { %vm412_vm11 = vcmask 908288   ;;  %vm545_vm12 = vcmask 1041409   ;;  %vm543_vm13 = vcmask 1040384   ;;  %vm548_vm14 = vcmask 1042434  }
   0xc   :  { %198 = vperm.xlu2 %753, %v729_v6   ;;  %vm551_vm15 = vcmask 1043459  }
  0x12   :  { %238 = vperm.xlu1 %752, %v730_v7   ;;  %170 = vperm.xlu0 %751, %v167_v8  }
  0x14   :  { %361 = vperm.xlu2 %753, %v734_v9  }
  0x1a   :  { %289 = vperm.xlu1 %752, %v732_v10   ;;  %274 = vperm.xlu0 %751, %v731_v11  }
  0x1c   :  { %393 = vperm.xlu2 %753, %v735_v12  }
  0x22   :  { %325 = vperm.xlu0 %751, %v733_v13   ;;  %v736_v13 = vld [vmem:[%s1165_s2 + $0x20] sm:$0xf] }
  0x5e   :  { %v97_v63 = vpop.permute.xlu2 %96 }
  0x66   :  { %v895_v11 = vpop.permute.xlu2 %198 }
  0x6e   :  { %v902_v12 = vpop.permute.xlu2 %361 }
  0x74   :  { %v63_v14 = vpop.permute.xlu1 %62  ;;  %v29_v15 = vpop.permute.xlu0 %28 }
  0x75   :  { %v31_v34 = vmul.f32 %v29_v15, %v22_v20  ;;  %v32_v35 = vmul.f32 %v29_v15, %v23_v21  ;;  %v33_v36 = vmul.f32 %v29_v15, %v24_v22  ;;  %v65_v44 = vmul.f32 %v63_v14, %v56_v27  ;;  %v737_v20 = vld [vmem:[%s1165_s2 + $0x24] sm:$0xf]  ;;  %v451_v22 = vld [vmem:[%s1167_s3] sm:$0xf] }
  0x76   :  { %v66_v45 = vmul.f32 %v63_v14, %v57_v28  ;;  %v34_v46 = vmul.f32 %v29_v15, %v25_v29  ;;  %v67_v47 = vmul.f32 %v63_v14, %v58_v30  ;;  %v68_v58 = vmul.f32 %v63_v14, %v59_v43  ;;  %v910_v14 = vpop.permute.xlu2 %393  ;;  %v738_v15 = vld [vmem:[%s1167_s3 + $0x4] sm:$0xf] }
  0x7c   :  { %v44_v33 = vpop.permute.xlu0 %43  ;;  %v82_v38 = vpop.permute.xlu1 %81 }
  0x7d   :  { %v46_v39 = vmul.f32 %v44_v33, %v37_v23  ;;  %v47_v40 = vmul.f32 %v44_v33, %v38_v24  ;;  %v48_v41 = vmul.f32 %v44_v33, %v39_v25  ;;  %v49_v42 = vmul.f32 %v44_v33, %v40_v26  ;;  %v741_v24 = vld [vmem:[%s1167_s3 + $0x10] sm:$0xf]  ;;  %v739_v25 = vld [vmem:[%s1167_s3 + $0x8] sm:$0xf]  ;;  %v740_v26 = vld [vmem:[%s1167_s3 + $0xc] sm:$0xf] }
  0x7e   :  { %v84_v51 = vmul.f32 %v82_v38, %v75_v31  ;;  %v85_v52 = vmul.f32 %v82_v38, %v76_v32  ;;  %v86_v54 = vmul.f32 %v82_v38, %v77_v37  ;;  %v87_v4 = vmul.f32 %v82_v38, %v78_v59 }
  0x7f   :  { %v50_v48 = vadd.f32 %v46_v39, %v31_v34  ;;  %v51_v49 = vadd.f32 %v47_v40, %v32_v35  ;;  %v52_v50 = vadd.f32 %v48_v41, %v33_v36  ;;  %v53_v53 = vadd.f32 %v49_v42, %v34_v46 }
  0x80   :  { %v107_v32 = vlaneseq }
  0x81   :  { %v69_v55 = vadd.f32 %v65_v44, %v50_v48  ;;  %v70_v56 = vadd.f32 %v66_v45, %v51_v49  ;;  %v71_v57 = vadd.f32 %v67_v47, %v52_v50  ;;  %v72_v0 = vadd.f32 %v68_v58, %v53_v53 }
  0x82   :  { %v108_v34 = vand.u32 127, %v107_v32  ;;  %v541_v58 = vrot.slane %v835_v17, 7 }
  0x83   :  { %v88_v60 = vadd.f32 %v84_v51, %v69_v55  ;;  %v89_v61 = vadd.f32 %v85_v52, %v70_v56  ;;  %v90_v62 = vadd.f32 %v86_v54, %v71_v57  ;;  %v91_v8 = vadd.f32 %v87_v4, %v72_v0 }
  0x84   :  { %v918_v21 = vpop.permute.xlu0 %170  ;;  %v932_v27 = vpop.permute.xlu1 %238  ;;  %v114_v35 = vand.u32 15, %v108_v34  ;;  %v109_v51 = vadd.s32 128, %v108_v34 }
  0x85   :  { %v99_v1 = vadd.f32 %v97_v63, %v88_v60  ;;  %v100_v2 = vadd.f32 %v97_v63, %v89_v61  ;;  %v101_v3 = vadd.f32 %v97_v63, %v90_v62  ;;  %v102_v9 = vadd.f32 %v97_v63, %v91_v8 }
  0x86   :  { %vm942_vm1 = vcmp.ge.s32.totalorder %v114_v35, 1  ;;  %v121_v55 = vand.u32 15, %v109_v51  ;;  %vm958_vm6 = vcmp.le.s32.totalorder %v114_v35, 14  ;;  %v1070_v61 = vrot.slane %v845_v19, 7 }
  0x87   :  { %v863_v5 = vmax.f32 %v99_v1, 0.0  ;;  %v865_v6 = vmax.f32 %v100_v2, 0.0  ;;  %v867_v7 = vmax.f32 %v101_v3, 0.0  ;;  %v872_v10 = vmax.f32 %v102_v9, 0.0 }
  0x88   :  { %vm954_vm5 = vcmp.ge.s32.totalorder %v121_v55, 1  ;;  %vm963_vm7 = vcmp.le.s32.totalorder %v121_v55, 14 }
  0x89   :  { %146 = vrot.lane.b32.xlu1 %v867_v7, %s755_s0  ;;  %144 = vrot.lane.b32.xlu0 %v865_v6, %s755_s0 }
  0x8a   :  { %142 = vrot.lane.b32.xlu2 %v863_v5, %s755_s0 }
  0x8c   :  { %v934_v28 = vpop.permute.xlu0 %274  ;;  %v936_v30 = vpop.permute.xlu1 %289 }
  0x91   :  { %181 = vrot.lane.b32.xlu0 %v867_v7, %s756_s22  ;;  %177 = vrot.lane.b32.xlu1 %v863_v5, %s756_s22 }
  0x92   :  { %148 = vrot.lane.b32.xlu2 %v872_v10, %s755_s0 }
  0x94   :  { %v938_v31 = vpop.permute.xlu0 %325 }
  0x99   :  { %209 = vrot.lane.b32.xlu0 %v863_v5, %s757_s23  ;;  %183 = vrot.lane.b32.xlu1 %v872_v10, %s756_s22 }
  0x9a   :  { %179 = vrot.lane.b32.xlu2 %v865_v6, %s756_s22 }
  0xa1   :  { %215 = vrot.lane.b32.xlu0 %v872_v10, %s757_s23  ;;  %211 = vrot.lane.b32.xlu1 %v865_v6, %s757_s23 }
  0xa2   :  { %213 = vrot.lane.b32.xlu2 %v867_v7, %s757_s23 }
  0xa9   :  { %251 = vrot.lane.b32.xlu0 %v865_v6, %s758_s24  ;;  %253 = vrot.lane.b32.xlu1 %v867_v7, %s758_s24 }
  0xaa   :  { %249 = vrot.lane.b32.xlu2 %v863_v5, %s758_s24 }
  0xb1   :  { %302 = vrot.lane.b32.xlu0 %v865_v6, %s759_s25  ;;  %304 = vrot.lane.b32.xlu1 %v867_v7, %s759_s25 }
  0xb2   :  { %255 = vrot.lane.b32.xlu2 %v872_v10, %s758_s24 }
  0xb9   :  { %342 = vrot.lane.b32.xlu0 %v872_v10, %s760_s26  ;;  %336 = vrot.lane.b32.xlu1 %v863_v5, %s760_s26 }
  0xba   :  { %300 = vrot.lane.b32.xlu2 %v863_v5, %s759_s25 }
  0xc1   :  { %374 = vrot.lane.b32.xlu0 %v865_v6, %s761_s27  ;;  %340 = vrot.lane.b32.xlu1 %v867_v7, %s760_s26 }
  0xc2   :  { %306 = vrot.lane.b32.xlu2 %v872_v10, %s759_s25 }
  0xc9   :  { %406 = vrot.lane.b32.xlu0 %v865_v6, %s762_s28  ;;  %378 = vrot.lane.b32.xlu1 %v872_v10, %s761_s27 }
  0xca   :  { %338 = vrot.lane.b32.xlu2 %v865_v6, %s760_s26 }
  0xd1   :  { %376 = vrot.lane.b32.xlu0 %v867_v7, %s761_s27  ;;  %410 = vrot.lane.b32.xlu1 %v872_v10, %s762_s28 }
  0xd2   :  { %372 = vrot.lane.b32.xlu2 %v863_v5, %s761_s27 }
  0xd9   :  { %429 = vperm.xlu0 %751, %v736_v13   ;;  %404 = vrot.lane.b32.xlu1 %v863_v5, %s762_s28 }
  0xda   :  { %408 = vrot.lane.b32.xlu2 %v867_v7, %s762_s28 }
  0xe1   :  { %473 = vperm.xlu0 %751, %v738_v15   ;;  %444 = vperm.xlu1 %752, %v737_v20  }
  0xe2   :  { %458 = vperm.xlu2 %753, %v451_v22  }
  0xe4   :  { %v143_v23 = vpop.permute.xlu2 %142 }
  0xe5   :  { %v157_v42 = vsel %vm150_vm0, 0.0, %v143_v23 }
  0xe6   :  { %v163_v43 = vsel %vm942_vm1, %v157_v42, 0.0 }
  0xe7   :  { %v173_v48 = vmul.f32 %v918_v21, %v163_v43 }
  0xe9   :  { %526 = vperm.xlu0 %751, %v741_v24   ;;  %492 = vperm.xlu1 %752, %v739_v25  }
  0xea   :  { %511 = vperm.xlu2 %753, %v740_v26  }
  0xec   :  { %v149_v29 = vpop.permute.xlu2 %148 }
  0xf4   :  { %v180_v33 = vpop.permute.xlu2 %179 }
  0xfb   :  { %v147_v36 = vpop.permute.xlu1 %146  ;;  %v145_v37 = vpop.permute.xlu0 %144 }
  0xfc   :  { %v152_v38 = vsel %vm150_vm0, %v147_v36, %v149_v29  ;;  %v151_v39 = vsel %vm150_vm0, %v143_v23, %v145_v37  ;;  %v214_v40 = vpop.permute.xlu2 %213  ;;  %v158_v57 = vsel %vm150_vm0, 0.0, %v147_v36  ;;  %vm685_vm0 = vcmask 1041408  }
  0xfd   :  { %v225_v0 = vsel %vm217_vm3, 0.0, %v214_v40  ;;  %v165_v8 = vsel %vm942_vm1, %v158_v57, 0.0  ;;  %v166_v20 = vsel %vm954_vm5, %v152_v38, 0.0  ;;  %v164_v22 = vsel %vm954_vm5, %v151_v39, 0.0 }
  0xfe   :  { %v232_v24 = vsel %vm958_vm6, %v225_v0, 0.0  ;;  %v175_v32 = vmul.f32 %v918_v21, %v165_v8  ;;  %v174_v36 = vmul.f32 %v918_v21, %v164_v22  ;;  %v176_v37 = vmul.f32 %v918_v21, %v166_v20 }
  0xff   :  { %v243_v38 = vmul.f32 %v932_v27, %v232_v24  ;;  %v295_v0 = vmul.f32 %v936_v30, %v872_v10  ;;  %v294_v20 = vmul.f32 %v936_v30, %v867_v7 }
 0x103   :  { %v182_v44 = vpop.permute.xlu0 %181  ;;  %v178_v45 = vpop.permute.xlu1 %177 }
 0x104   :  { %v192_v46 = vsel %vm185_vm2, 0.0, %v178_v45  ;;  %v250_v47 = vpop.permute.xlu2 %249  ;;  %v193_v60 = vsel %vm185_vm2, 0.0, %v182_v44  ;;  %v186_v1 = vsel %vm185_vm2, %v178_v45, %v180_v33 }
 0x105   :  { %v201_v49 = vmul.f32 %v895_v11, %v192_v46  ;;  %v264_v9 = vsel %vm257_vm4, 0.0, %v250_v47  ;;  %v203_v23 = vmul.f32 %v895_v11, %v193_v60  ;;  %v202_v25 = vmul.f32 %v895_v11, %v186_v1 }
 0x106   :  { %v266_v33 = vsel %vm942_vm1, %v264_v9, 0.0 }
 0x107   :  { %v205_v50 = vadd.f32 %v201_v49, %v173_v48  ;;  %v207_v39 = vadd.f32 %v203_v23, %v175_v32  ;;  %v206_v42 = vadd.f32 %v202_v25, %v174_v36  ;;  %v277_v43 = vmul.f32 %v934_v28, %v266_v33 }
 0x109   :  { %v247_v1 = vadd.f32 %v243_v38, %v207_v39 }
 0x10b   :  { %v210_v52 = vpop.permute.xlu0 %209  ;;  %v184_v53 = vpop.permute.xlu1 %183 }
 0x10c   :  { %v256_v54 = vpop.permute.xlu2 %255  ;;  %v224_v56 = vsel %vm217_vm3, 0.0, %v210_v52  ;;  %v187_v13 = vsel %vm185_vm2, %v182_v44, %v184_v53 }
 0x10d   :  { %v230_v2 = vsel %vm958_vm6, %v224_v56, 0.0  ;;  %v204_v34 = vmul.f32 %v895_v11, %v187_v13 }
 0x10e   :  { %v241_v26 = vmul.f32 %v932_v27, %v230_v2 }
 0x10f   :  { %v208_v48 = vadd.f32 %v204_v34, %v176_v37 }
 0x110   :  { %v245_v44 = vadd.f32 %v241_v26, %v205_v50 }
 0x112   :  { %v281_v60 = vadd.f32 %v277_v43, %v245_v44 }
 0x113   :  { %v216_v62 = vpop.permute.xlu0 %215  ;;  %v212_v63 = vpop.permute.xlu1 %211 }
 0x114   :  { %v219_v3 = vsel %vm217_vm3, %v214_v40, %v216_v62  ;;  %v301_v4 = vpop.permute.xlu2 %300  ;;  %v218_v15 = vsel %vm217_vm3, %v210_v52, %v212_v63 }
 0x115   :  { %v233_v29 = vsel %vm963_vm7, %v219_v3, 0.0  ;;  %v231_v35 = vsel %vm963_vm7, %v218_v15, 0.0  ;;  %v292_v3 = vmul.f32 %v936_v30, %v863_v5 }
 0x116   :  { %v244_v40 = vmul.f32 %v932_v27, %v233_v29  ;;  %v242_v45 = vmul.f32 %v932_v27, %v231_v35 }
 0x117   :  { %v296_v23 = vadd.f32 %v292_v3, %v281_v60 }
 0x118   :  { %v248_v56 = vadd.f32 %v244_v40, %v208_v48  ;;  %v246_v62 = vadd.f32 %v242_v45, %v206_v42 }
 0x11b   :  { %v252_v11 = vpop.permute.xlu0 %251  ;;  %v254_v46 = vpop.permute.xlu1 %253 }
 0x11c   :  { %v258_v49 = vsel %vm257_vm4, %v250_v47, %v252_v11  ;;  %v259_v51 = vsel %vm257_vm4, %v254_v46, %v256_v54  ;;  %v265_v21 = vsel %vm257_vm4, 0.0, %v254_v46  ;;  %v307_v52 = vpop.permute.xlu2 %306 }
 0x11d   :  { %v267_v53 = vsel %vm954_vm5, %v258_v49, 0.0  ;;  %v268_v55 = vsel %vm942_vm1, %v265_v21, 0.0  ;;  %v269_v50 = vsel %vm954_vm5, %v259_v51, 0.0  ;;  %v316_v27 = vsel %vm308_vm8, %v307_v52, 0.0 }
 0x11e   :  { %v278_v57 = vmul.f32 %v934_v28, %v267_v53  ;;  %v279_v47 = vmul.f32 %v934_v28, %v268_v55  ;;  %v280_v54 = vmul.f32 %v934_v28, %v269_v50  ;;  %v320_v63 = vsel %vm963_vm7, %v316_v27, 0.0 }
 0x11f   :  { %v331_v15 = vmul.f32 %v938_v31, %v320_v63  ;;  %v293_v28 = vmul.f32 %v936_v30, %v865_v6 }
 0x120   :  { %v284_v2 = vadd.f32 %v280_v54, %v248_v56  ;;  %v282_v8 = vadd.f32 %v278_v57, %v246_v62  ;;  %v283_v9 = vadd.f32 %v279_v47, %v247_v1 }
 0x122   :  { %v299_v13 = vadd.f32 %v295_v0, %v284_v2  ;;  %v297_v29 = vadd.f32 %v293_v28, %v282_v8  ;;  %v298_v34 = vadd.f32 %v294_v20, %v283_v9 }
 0x123   :  { %v303_v22 = vpop.permute.xlu0 %302  ;;  %v305_v24 = vpop.permute.xlu1 %304 }
 0x124   :  { %v335_v10 = vadd.f32 %v331_v15, %v299_v13  ;;  %v309_v25 = vsel %vm308_vm8, %v301_v4, %v303_v22  ;;  %v315_v26 = vsel %vm308_vm8, %v303_v22, 0.0  ;;  %v310_v5 = vsel %vm308_vm8, %v305_v24, %v307_v52  ;;  %v339_v43 = vpop.permute.xlu2 %338 }
 0x125   :  { %v317_v32 = vsel %vm958_vm6, %v309_v25, 0.0  ;;  %v318_v6 = vsel %vm963_vm7, %v315_v26, 0.0  ;;  %v319_v7 = vsel %vm958_vm6, %v310_v5, 0.0  ;;  %v351_v48 = vsel %vm344_vm9, %v339_v43, 0.0 }
 0x126   :  { %v328_v30 = vmul.f32 %v938_v31, %v317_v32  ;;  %v329_v33 = vmul.f32 %v938_v31, %v318_v6  ;;  %v330_v4 = vmul.f32 %v938_v31, %v319_v7  ;;  %v354_v53 = vsel %vm954_vm5, %v351_v48, 0.0 }
 0x127   :  { %v365_v56 = vmul.f32 %v902_v12, %v354_v53  ;;  %v1093_v48 = vsel %vm548_vm14, %v840_v18, %v1070_v61 }
 0x128   :  { %v332_v35 = vadd.f32 %v328_v30, %v296_v23  ;;  %v333_v36 = vadd.f32 %v329_v33, %v297_v29  ;;  %v334_v37 = vadd.f32 %v330_v4, %v298_v34  ;;  %v1067_v34 = vsel %vm545_vm12, %v830_v16, %v541_v58 }
 0x12a   :  { %v369_v62 = vadd.f32 %v365_v56, %v333_v36 }
 0x12b   :  { %v343_v38 = vpop.permute.xlu0 %342  ;;  %v337_v39 = vpop.permute.xlu1 %336 }
 0x12c   :  { %v373_v11 = vpop.permute.xlu2 %372  ;;  %v352_v46 = vsel %vm344_vm9, %v343_v38, 0.0  ;;  %v345_v49 = vsel %vm344_vm9, %v337_v39, %v339_v43  ;;  %v547_v39 = vrot.slane %v1067_v34, 1 }
 0x12d   :  { %v356_v21 = vsel %vm954_vm5, %v352_v46, 0.0  ;;  %v353_v55 = vsel %vm942_vm1, %v345_v49, 0.0  ;;  %v1088_v46 = vsel %vm545_vm12, %v840_v18, %v1070_v61  ;;  %v1098_v49 = vsel %vm551_vm15, %v840_v18, %v1070_v61 }
 0x12e   :  { %v367_v27 = vmul.f32 %v902_v12, %v356_v21  ;;  %v364_v57 = vmul.f32 %v902_v12, %v353_v55 }
 0x130   :  { %v371_v41 = vadd.f32 %v367_v27, %v335_v10  ;;  %v368_v9 = vadd.f32 %v364_v57, %v332_v35 }
 0x133   :  { %v375_v40 = vpop.permute.xlu0 %374  ;;  %v341_v42 = vpop.permute.xlu1 %340 }
 0x134   :  { %v346_v51 = vsel %vm344_vm9, %v341_v42, %v343_v38  ;;  %v381_v54 = vsel %vm380_vm10, %v373_v11, %v375_v40  ;;  %v387_v60 = vsel %vm380_vm10, %v375_v40, 0.0  ;;  %v409_v63 = vpop.permute.xlu2 %408  ;;  %v1079_v40 = vsel %vm548_vm14, %v830_v16, %v541_v58 }
 0x135   :  { %v355_v50 = vsel %vm942_vm1, %v346_v51, 0.0  ;;  %v396_v13 = vmul.f32 %v910_v14, %v381_v54  ;;  %v1083_v11 = vsel %vm551_vm15, %v830_v16, %v541_v58 }
 0x136   :  { %v366_v47 = vmul.f32 %v902_v12, %v355_v50  ;;  %v397_v12 = vmul.f32 %v910_v14, %v387_v60 }
 0x138   :  { %v370_v15 = vadd.f32 %v366_v47, %v334_v37  ;;  %v401_v7 = vadd.f32 %v397_v12, %v369_v62  ;;  %v1074_v37 = vsel %vm543_vm13, %v830_v16, %v541_v58 }
 0x13b   :  { %v407_v44 = vpop.permute.xlu0 %406  ;;  %v379_v45 = vpop.permute.xlu1 %378 }
 0x13c   :  { %v388_v0 = vsel %vm380_vm10, %v379_v45, 0.0  ;;  %v419_v2 = vsel %vm412_vm11, %v407_v44, 0.0  ;;  %v459_v42 = vpop.permute.xlu2 %458 }
 0x13d   :  { %v399_v17 = vmul.f32 %v910_v14, %v388_v0  ;;  %v422_v24 = vsel %vm963_vm7, %v419_v2, 0.0 }
 0x13f   :  { %v403_v30 = vadd.f32 %v399_v17, %v371_v41 }
 0x143   :  { %v377_v31 = vpop.permute.xlu0 %376  ;;  %v411_v52 = vpop.permute.xlu1 %410 }
 0x144   :  { %v382_v1 = vsel %vm380_vm10, %v377_v31, %v379_v45  ;;  %v414_v3 = vsel %vm412_vm11, %v409_v63, %v411_v52  ;;  %v420_v8 = vsel %vm412_vm11, %v411_v52, 0.0 }
 0x145   :  { %v398_v22 = vmul.f32 %v910_v14, %v382_v1  ;;  %v423_v10 = vsel %vm958_vm6, %v414_v3, 0.0  ;;  %v424_v25 = vsel %vm963_vm7, %v420_v8, 0.0  ;;  %v400_v14 = vadd.f32 %v396_v13, %v368_v9 }
 0x147   :  { %v402_v33 = vadd.f32 %v398_v22, %v370_v15 }
 0x14b   :  { %v430_v28 = vpop.permute.xlu0 %429  ;;  %v405_v20 = vpop.permute.xlu1 %404 }
 0x14c   :  { %v413_v23 = vsel %vm412_vm11, %v405_v20, %v407_v44  ;;  %v433_v5 = vmul.f32 %v430_v28, %v422_v24  ;;  %v434_v29 = vmul.f32 %v430_v28, %v423_v10  ;;  %v435_v32 = vmul.f32 %v430_v28, %v424_v25  ;;  %v512_v25 = vpop.permute.xlu2 %511 }
 0x14d   :  { %v421_v26 = vsel %vm958_vm6, %v413_v23, 0.0 }
 0x14e   :  { %v432_v6 = vmul.f32 %v430_v28, %v421_v26  ;;  %v437_v4 = vadd.f32 %v433_v5, %v401_v7  ;;  %v438_v35 = vadd.f32 %v434_v29, %v402_v33  ;;  %v439_v36 = vadd.f32 %v435_v32, %v403_v30 }
 0x14f   :  { %v1103_v33 = vsel %vm543_vm13, %v840_v18, %v1070_v61  ;;  %v582_v18 = vperm.slane %v1074_v37, 1  ;;  %v583_v61 = vperm.slane %v547_v39, 0 }
 0x150   :  { %v436_v59 = vadd.f32 %v432_v6, %v400_v14 }
 0x153   :  { %v445_v38 = vpop.permute.xlu1 %444  ;;  %v474_v27 = vpop.permute.xlu0 %473 }
 0x154   :  { %v447_v43 = vadd.f32 %v445_v38, %v436_v59  ;;  %v448_v19 = vadd.f32 %v445_v38, %v437_v4  ;;  %v449_v44 = vadd.f32 %v445_v38, %v438_v35  ;;  %v450_v45 = vadd.f32 %v445_v38, %v439_v36 }
 0x155   :  { %v550_v59 = vrot.slane %v1079_v40, 2  ;;  %v553_v4 = vrot.slane %v1083_v11, 3  ;;  %v581_v35 = vperm.slane %v1074_v37, 0 }
 0x156   :  { %v452_v51 = vperm.slane %v447_v43, 0  ;;  %v453_v21 = vperm.slane %v448_v19, 0  ;;  %v454_v31 = vperm.slane %v449_v44, 0  ;;  %v455_v16 = vperm.slane %v450_v45, 0 }
 0x157   :  { %v467_v52 = vperm.slane %v447_v43, 1  ;;  %v468_v53 = vperm.slane %v448_v19, 1  ;;  %v469_v55 = vperm.slane %v449_v44, 1  ;;  %v470_v50 = vperm.slane %v450_v45, 1 }
 0x158   :  { %v461_v56 = vmul.f32 %v459_v42, %v452_v51  ;;  %v462_v57 = vmul.f32 %v459_v42, %v453_v21  ;;  %v463_v47 = vmul.f32 %v459_v42, %v454_v31  ;;  %v464_v54 = vmul.f32 %v459_v42, %v455_v16 }
 0x159   :  { %v476_v60 = vmul.f32 %v474_v27, %v467_v52  ;;  %v477_v58 = vmul.f32 %v474_v27, %v468_v53  ;;  %v478_v62 = vmul.f32 %v474_v27, %v469_v55  ;;  %v479_v63 = vmul.f32 %v474_v27, %v470_v50 }
 0x15a   :  { %v486_v0 = vperm.slane %v447_v43, 2  ;;  %v487_v1 = vperm.slane %v448_v19, 2  ;;  %v488_v41 = vperm.slane %v449_v44, 2  ;;  %v489_v2 = vperm.slane %v450_v45, 2 }
 0x15b   :  { %v493_v3 = vpop.permute.xlu1 %492  ;;  %v480_v8 = vadd.f32 %v476_v60, %v461_v56  ;;  %v481_v9 = vadd.f32 %v477_v58, %v462_v57  ;;  %v482_v13 = vadd.f32 %v478_v62, %v463_v47  ;;  %v483_v12 = vadd.f32 %v479_v63, %v464_v54 }
 0x15c   :  { %v495_v15 = vmul.f32 %v493_v3, %v486_v0  ;;  %v496_v28 = vmul.f32 %v493_v3, %v487_v1  ;;  %v497_v20 = vmul.f32 %v493_v3, %v488_v41  ;;  %v498_v17 = vmul.f32 %v493_v3, %v489_v2 }
 0x15d   :  { %v505_v22 = vperm.slane %v447_v43, 3  ;;  %v506_v23 = vperm.slane %v448_v19, 3  ;;  %v507_v24 = vperm.slane %v449_v44, 3  ;;  %v508_v10 = vperm.slane %v450_v45, 3  ;;  %v527_v19 = vpop.permute.xlu0 %526 }
 0x15e   :  { %v499_v26 = vadd.f32 %v495_v15, %v480_v8  ;;  %v500_v5 = vadd.f32 %v496_v28, %v481_v9  ;;  %v501_v29 = vadd.f32 %v497_v20, %v482_v13  ;;  %v502_v32 = vadd.f32 %v498_v17, %v483_v12 }
 0x15f   :  { %v514_v6 = vmul.f32 %v512_v25, %v505_v22  ;;  %v515_v14 = vmul.f32 %v512_v25, %v506_v23  ;;  %v516_v7 = vmul.f32 %v512_v25, %v507_v24  ;;  %v517_v30 = vmul.f32 %v512_v25, %v508_v10 }
 0x160   :  { %v556_v44 = vrot.slane %v1088_v46, 1  ;;  %v558_v45 = vrot.slane %v1093_v48, 2  ;;  %v560_v51 = vrot.slane %v1098_v49, 3  ;;  %v584_v31 = vperm.slane %v547_v39, 1 }
 0x161   :  { %v518_v36 = vadd.f32 %v514_v6, %v499_v26  ;;  %v519_v38 = vadd.f32 %v515_v14, %v500_v5  ;;  %v520_v42 = vadd.f32 %v516_v7, %v501_v29  ;;  %v521_v43 = vadd.f32 %v517_v30, %v502_v32 }
 0x162   :  { %v585_v16 = vperm.slane %v550_v59, 0  ;;  %v586_v52 = vperm.slane %v550_v59, 1  ;;  %v587_v55 = vperm.slane %v553_v4, 0  ;;  %v588_v46 = vperm.slane %v553_v4, 1 }
 0x163   :  { %v529_v40 = vadd.f32 %v527_v19, %v518_v36  ;;  %v530_v11 = vadd.f32 %v527_v19, %v519_v38  ;;  %v532_v21 = vadd.f32 %v527_v19, %v521_v43  ;;  %v531_v53 = vadd.f32 %v527_v19, %v520_v42 }
 0x164   :  { %v589_v49 = vperm.slane %v1103_v33, 0  ;;  %v590_v27 = vperm.slane %v1103_v33, 1  ;;  %v591_v56 = vperm.slane %v556_v44, 0  ;;  %v592_v57 = vperm.slane %v556_v44, 1 }
 0x165   :  { %v534_v50 = vmax.f32 %v530_v11, 0.0  ;;  %v536_v48 = vmax.f32 %v532_v21, 0.0  ;;  %v593_v47 = vperm.slane %v558_v45, 0  ;;  %v533_v54 = vmax.f32 %v529_v40, 0.0 }
 0x166   :  { %v594_v62 = vperm.slane %v558_v45, 1  ;;  %v595_v34 = vperm.slane %v560_v51, 0  ;;  %v596_v39 = vperm.slane %v560_v51, 1  ;;  %v535_v63 = vmax.f32 %v531_v53, 0.0 }
 0x167   :  { %v565_v60 = vrot.slane %v534_v50, 7  ;;  %v566_v58 = vrot.slane %v536_v48, 7 }
 0x169   :  { %v567_v0 = vsel %vm543_vm13, %v533_v54, %v565_v60  ;;  %v568_v1 = vsel %vm545_vm12, %v533_v54, %v565_v60  ;;  %v570_v41 = vsel %vm548_vm14, %v533_v54, %v565_v60  ;;  %v572_v2 = vsel %vm551_vm15, %v533_v54, %v565_v60 }
 0x16a   :  { %v569_v3 = vrot.slane %v568_v1, 1  ;;  %v571_v8 = vrot.slane %v570_v41, 2  ;;  %v573_v9 = vrot.slane %v572_v2, 3  ;;  %v574_v13 = vsel %vm543_vm13, %v535_v63, %v566_v58 }
 0x16b   :  { %v575_v12 = vsel %vm545_vm12, %v535_v63, %v566_v58  ;;  %v577_v15 = vsel %vm548_vm14, %v535_v63, %v566_v58  ;;  %v579_v28 = vsel %vm551_vm15, %v535_v63, %v566_v58  ;;  %v613_v20 = vperm.slane %v567_v0, 0 }
 0x16c   :  { %v576_v17 = vrot.slane %v575_v12, 1  ;;  %v578_v22 = vrot.slane %v577_v15, 2  ;;  %v580_v23 = vrot.slane %v579_v28, 3  ;;  %v614_v24 = vperm.slane %v567_v0, 1 }
 0x16d   :  { %v615_v10 = vperm.slane %v569_v3, 0  ;;  %v616_v25 = vperm.slane %v569_v3, 1  ;;  %v617_v26 = vperm.slane %v571_v8, 0  ;;  %v618_v5 = vperm.slane %v571_v8, 1 }
 0x16e   :  { %v619_v29 = vperm.slane %v573_v9, 0  ;;  %v620_v32 = vperm.slane %v573_v9, 1  ;;  %v621_v6 = vperm.slane %v574_v13, 0  ;;  %v622_v14 = vperm.slane %v574_v13, 1 }
 0x16f   :  { %v623_v7 = vperm.slane %v576_v17, 0  ;;  %v624_v30 = vperm.slane %v576_v17, 1  ;;  %v625_v33 = vperm.slane %v578_v22, 0  ;;  %v626_v59 = vperm.slane %v578_v22, 1 }
 0x170   :  { %v627_v4 = vperm.slane %v580_v23, 0  ;;  %v628_v36 = vperm.slane %v580_v23, 1  ;;  %v645_v38 = vsel %vm543_vm13, %v581_v35, %v613_v20  ;;  %v646_v42 = vsel %vm543_vm13, %v582_v18, %v614_v24 }
 0x171   :  { %v647_v43 = vsel %vm543_vm13, %v583_v61, %v615_v10  ;;  %v648_v19 = vsel %vm543_vm13, %v584_v31, %v616_v25  ;;  %v649_v44 = vsel %vm543_vm13, %v585_v16, %v617_v26  ;;  %v650_v45 = vsel %vm543_vm13, %v586_v52, %v618_v5 }
 0x172   :  { %v651_v51 = vsel %vm543_vm13, %v587_v55, %v619_v29  ;;  %v652_v40 = vsel %vm543_vm13, %v588_v46, %v620_v32  ;;  %v653_v11 = vsel %vm543_vm13, %v589_v49, %v621_v6  ;;  %v654_v37 = vsel %vm543_vm13, %v590_v27, %v622_v14 }
 0x173   :  { %v655_v35 = vsel %vm543_vm13, %v591_v56, %v623_v7  ;;  %v656_v18 = vsel %vm543_vm13, %v592_v57, %v624_v30  ;;  %v657_v61 = vsel %vm543_vm13, %v593_v47, %v625_v33  ;;  %v658_v21 = vsel %vm543_vm13, %v594_v62, %v626_v59 }
 0x174   :  { %v659_v31 = vsel %vm543_vm13, %v595_v34, %v627_v4  ;;  %v660_v16 = vsel %vm543_vm13, %v596_v39, %v628_v36  ;;  %v677_v52 = vrot.slane %v646_v42, 6  ;;  %v678_v53 = vrot.slane %v648_v19, 6 }
 0x175   :  { %v679_v55 = vrot.slane %v650_v45, 6  ;;  %v680_v46 = vrot.slane %v652_v40, 6  ;;  %v681_v50 = vrot.slane %v654_v37, 6  ;;  %v682_v48 = vrot.slane %v656_v18, 6 }
 0x176   :  { %v683_v49 = vrot.slane %v658_v21, 6  ;;  %v684_v27 = vrot.slane %v660_v16, 6  ;;  %v686_v56 = vsel %vm685_vm0, %v645_v38, %v677_v52  ;;  %v687_v57 = vsel %vm685_vm0, %v647_v43, %v678_v53 }
 0x177   :  { %v688_v47 = vsel %vm685_vm0, %v649_v44, %v679_v55  ;;  %v689_v54 = vsel %vm685_vm0, %v651_v51, %v680_v46  ;;  %v690_v60 = vsel %vm685_vm0, %v653_v11, %v681_v50  ;;  %v691_v58 = vsel %vm685_vm0, %v655_v35, %v682_v48  ;;  %694 = vst [vmem:[#allocation1] ss:$4 sm:$0xff] %v686_v56 }
 0x178   :  { %v692_v62 = vsel %vm685_vm0, %v657_v61, %v683_v49  ;;  %v693_v34 = vsel %vm685_vm0, %v659_v31, %v684_v27  ;;  %696 = vst [vmem:[#allocation1 + $0x1] ss:$4 sm:$0xff] %v687_v57 }
 0x179   :  { %698 = vst [vmem:[#allocation1 + $0x2] ss:$4 sm:$0xff] %v688_v47 }
 0x17a   :  { %700 = vst [vmem:[#allocation1 + $0x3] ss:$4 sm:$0xff] %v689_v54 }
 0x17b   :  { %704 = vst [vmem:[#allocation1 + $0x20] ss:$4 sm:$0xff] %v690_v60 }
 0x17c   :  { %706 = vst [vmem:[#allocation1 + $0x21] ss:$4 sm:$0xff] %v691_v58 }
 0x17d   :  { %708 = vst [vmem:[#allocation1 + $0x22] ss:$4 sm:$0xff] %v692_v62 }
 0x17e   :  { %710 = vst [vmem:[#allocation1 + $0x23] ss:$4 sm:$0xff] %v693_v34 }
 0x181   :  { %v701_v39 = vld.sshfl [vmem:[#allocation1] sm:$0xff pattern:$0x73625140]  ;;  %v702_v63 = vld.sshfl [vmem:[#allocation1 + $0x8] sm:$0xff pattern:$0x73625140] }
 0x182   :  { %717 = vst [vmem:[%s1168_s4] sm:$0xff] %v701_v39 }
 0x183   :  { %718 = vst [vmem:[%s1168_s4 + $0x8] sm:$0xff] %v702_v63 }
 0x185   :  { %v711_v0 = vld.sshfl [vmem:[#allocation1 + $0x20] sm:$0xff pattern:$0x73625140]  ;;  %v712_v1 = vld.sshfl [vmem:[#allocation1 + $0x28] sm:$0xff pattern:$0x73625140] }
 0x186   :  { %719 = vst [vmem:[%s1168_s4 + $0x10] sm:$0xff] %v711_v0 }
 0x187   :  { %720 = vst [vmem:[%s1168_s4 + $0x18] sm:$0xff] %v712_v1 }

</bundles_post_ra>
